<compile_context>
chip_gen: v5e
topology: v5e:2x2
jax: 0.10.0
libtpu: 0.0.40
codegen_flags: <defaults>
</compile_context>

<pallas_src>
import jax
import jax.numpy as jnp
from jax.experimental import pallas as pl
from jax.experimental.pallas import tpu as pltpu


def _round_up(a, b):
    return ((a + b - 1) // b) * b


def channel_attention(x, w1, w2, *, hw_tile=None, batch_tile=1):
    """x: (B, C, H, W) NCHW; w1: (C//r, C); w2: (C, C//r). Returns (B, C, 1, 1)."""
    B, C, H, W = x.shape
    Cr = w1.shape[0]
    hw = H * W
    tb = batch_tile
    assert B % tb == 0, "batch_tile must divide B"

    # --- tile sizing: ~2 MiB per x buffer, multiple of 128 lanes, capped so the
    # unrolled per-tile chunk loop stays short (<= 16 chunks).
    itemsize = jnp.dtype(x.dtype).itemsize
    if hw_tile is None:
        target_bytes = 2 * 1024 * 1024
        lanes = max(128, target_bytes // max(1, tb * C * itemsize))
        lanes = (lanes // 128) * 128
        hw_tile = min(_round_up(hw, 128), lanes, 2048)
    hw_tile = max(128, _round_up(int(hw_tile), 128))

    hw_pad = _round_up(hw, hw_tile)
    n_k = hw_pad // hw_tile
    n_chunks = hw_tile // 128
    needs_mask = hw_pad != hw
    inv_hw = 1.0 / float(hw)

    x_flat = x.reshape(B, C, hw)
    if needs_mask:
        # Zero padding: harmless for the sum; masked to -inf for the max below.
        x_flat = jnp.pad(x_flat, ((0, 0), (0, 0), (0, hw_pad - hw)))

    w1t = jnp.transpose(w1)  # (C, Cr)
    w2t = jnp.transpose(w2)  # (Cr, C)

    def kernel(x_ref, w1t_ref, w2t_ref, o_ref, max_acc, sum_acc):
        k = pl.program_id(1)

        @pl.when(k == 0)
        def _init():
            max_acc[...] = jnp.full_like(max_acc, -jnp.inf)
            sum_acc[...] = jnp.zeros_like(sum_acc)

        # Streaming reduce: lane-aligned 128-wide chunks, elementwise max/add
        # into the (tb, C, 128) accumulators.  Max stays in the input dtype;
        # the sum accumulates in f32 (only a per-chunk cast, no whole-tile copy).
        m = max_acc[...]
        s = sum_acc[...]
        for i in range(n_chunks):
            chunk = x_ref[:, :, pl.ds(i * 128, 128)]  # (tb, C, 128)
            if needs_mask:
                pos = (k * hw_tile + i * 128
                       + jax.lax.broadcasted_iota(jnp.int32, (1, 1, 128), 2))
                chunk_for_max = jnp.where(
                    pos < hw, chunk, jnp.array(-jnp.inf, dtype=chunk.dtype))
            else:
                chunk_for_max = chunk
            m = jnp.maximum(m, chunk_for_max)
            s = s + chunk.astype(jnp.float32)
        max_acc[...] = m
        sum_acc[...] = s

        # Finalize on the last spatial tile: single cross-lane reduce, fused SE
        # MLP for both pooled branches, sigmoid, write the (tb, 1, C) output.
        @pl.when(k == n_k - 1)
        def _finalize():
            max_p = jnp.max(max_acc[...], axis=-1).astype(jnp.float32)   # (tb, C)
            avg_p = jnp.sum(sum_acc[...], axis=-1) * inv_hw              # (tb, C)
            pooled = jnp.concatenate([max_p, avg_p], axis=0)             # (2tb, C)
            w1t_v = w1t_ref[...].astype(jnp.float32)
            w2t_v = w2t_ref[...].astype(jnp.float32)
            h = jnp.maximum(
                jnp.dot(pooled, w1t_v, preferred_element_type=jnp.float32), 0.0)
            y = jnp.dot(h, w2t_v, preferred_element_type=jnp.float32)    # (2tb, C)
            out = jax.nn.sigmoid(y[:tb] + y[tb:])                        # (tb, C)
            o_ref[...] = out.reshape(tb, 1, C).astype(o_ref.dtype)

    grid_spec = pltpu.PrefetchScalarGridSpec(
        num_scalar_prefetch=0,
        grid=(B // tb, n_k),
        in_specs=[
            # x streams over the spatial axis; weights stay resident (constant index).
            # TODO(synk): if a trace shows exposed DMA per step, add
            # pipeline_mode=pl.Buffered(3) on this spec.
            pl.BlockSpec((tb, C, hw_tile), lambda b, kk: (b, 0, kk)),
            pl.BlockSpec((C, Cr), lambda b, kk: (0, 0)),
            pl.BlockSpec((Cr, C), lambda b, kk: (0, 0)),
        ],
        # Output block index is constant across the hw axis -> stays resident,
        # written only at finalize.
        out_specs=pl.BlockSpec((tb, 1, C), lambda b, kk: (b, 0, 0)),
        scratch_shapes=[
            pltpu.VMEM((tb, C, 128), x.dtype),      # running max (input dtype)
            pltpu.VMEM((tb, C, 128), jnp.float32),  # running sum (f32)
        ],
    )

    out = pl.pallas_call(
        kernel,
        out_shape=jax.ShapeDtypeStruct((B, 1, C), x.dtype),
        grid_spec=grid_spec,
        compiler_params=pltpu.CompilerParams(
            dimension_semantics=("parallel", "arbitrary"),
            vmem_limit_bytes=48 * 1024 * 1024,
        ),
    )(x_flat, w1t, w2t)

    return out.reshape(B, C, 1, 1)


def reference(x, w1, w2):
    # Pure-JAX reference matching the PyTorch forward.
    max_p = jnp.max(x, axis=(2, 3))
    avg_p = jnp.mean(x, axis=(2, 3))

    def se(p):
        h = jnp.maximum(p @ w1.T, 0.0)
        return h @ w2.T

    return jax.nn.sigmoid(se(max_p) + se(avg_p))[:, :, None, None]


if __name__ == "__main__":
    B, C, H, W = 2, 32, 24, 24
    reduction = 16
    Cr = C // reduction  # 2

    key = jax.random.PRNGKey(0)
    kx, k1, k2 = jax.random.split(key, 3)
    x = jax.random.normal(kx, (B, C, H, W), dtype=jnp.float32)
    # Conv2d(channel, channel//reduction, 1, bias=False) -> weight (Cr, C)
    w1 = jax.random.normal(k1, (Cr, C), dtype=jnp.float32) * 0.1
    # Conv2d(channel//reduction, channel, 1, bias=False) -> weight (C, Cr)
    w2 = jax.random.normal(k2, (C, Cr), dtype=jnp.float32) * 0.1

    ref = reference(x, w1, w2)

    # Explicit small tile: exercises the multi-step spatial reduction and the
    # padded-tail masking path (H*W = 576 -> padded to 768, 3 tiles of 256).
    out = jax.block_until_ready(channel_attention(x, w1, w2, hw_tile=256))
    assert out.shape == (B, C, 1, 1)
    assert jnp.allclose(out, ref, atol=1e-5, rtol=1e-5), "mismatch vs reference (tiled)"

    # Default auto-sized tile.
    out2 = jax.block_until_ready(channel_attention(x, w1, w2))
    assert jnp.allclose(out2, ref, atol=1e-5, rtol=1e-5), "mismatch vs reference (auto tile)"

    print("KERNEL_OK")
</pallas_src>

<mosaic_0001>
module attributes {stable_mosaic.version = 11 : i64} {
  func.func @kernel(%arg0: i32, %arg1: i32, %arg2: memref<1x32x256xf32, #tpu.memory_space<vmem>>, %arg3: memref<32x2xf32, #tpu.memory_space<vmem>>, %arg4: memref<2x32xf32, #tpu.memory_space<vmem>>, %arg5: memref<1x1x32xf32, #tpu.memory_space<vmem>>, %arg6: memref<1x32x128xf32, #tpu.memory_space<vmem>>, %arg7: memref<1x32x128xf32, #tpu.memory_space<vmem>>) attributes {dimension_semantics = [#tpu.dimension_semantics<parallel>, #tpu.dimension_semantics<arbitrary>], iteration_bounds = array<i64: 2, 3>, scalar_prefetch = 0 : i64, scratch_operands = 2 : i64, tpu.core_type = #tpu.core_type<tc>, window_params = [{transform_indices = @transform_0, window_bounds = array<i64: 1, 32, 256>}, {pipeline_mode = #tpu.pipeline_mode<synchronous>, transform_indices = @transform_1, window_bounds = array<i64: 32, 2>}, {pipeline_mode = #tpu.pipeline_mode<synchronous>, transform_indices = @transform_2, window_bounds = array<i64: 2, 32>}, {transform_indices = @transform_3, window_bounds = array<i64: 1, 1, 32>}]} {
    %c0_i32 = arith.constant 0 : i32
    %0 = arith.cmpi eq, %arg1, %c0_i32 : i32
    %1 = arith.extui %0 : i1 to i32
    %c0_i32_0 = arith.constant 0 : i32
    %2 = arith.cmpi ne, %1, %c0_i32_0 : i32
    scf.if %2 {
      %cst_22 = arith.constant 0xFF800000 : f32
      %38 = vector.broadcast %cst_22 : f32 to vector<1x32x128xf32>
      %c0_23 = arith.constant 0 : index
      %c0_24 = arith.constant 0 : index
      %c0_25 = arith.constant 0 : index
      %39 = vector.load %arg6[%c0_23, %c0_24, %c0_25] : memref<1x32x128xf32, #tpu.memory_space<vmem>>, vector<1x32x128xf32>
      tpu.vector_store %arg6[%c0_23, %c0_24, %c0_25], %38 {strides = array<i32>} : memref<1x32x128xf32, #tpu.memory_space<vmem>>, vector<1x32x128xf32>,
      %cst_26 = arith.constant 0.000000e+00 : f32
      %40 = vector.broadcast %cst_26 : f32 to vector<1x32x128xf32>
      %c0_27 = arith.constant 0 : index
      %c0_28 = arith.constant 0 : index
      %c0_29 = arith.constant 0 : index
      %41 = vector.load %arg7[%c0_27, %c0_28, %c0_29] : memref<1x32x128xf32, #tpu.memory_space<vmem>>, vector<1x32x128xf32>
      tpu.vector_store %arg7[%c0_27, %c0_28, %c0_29], %40 {strides = array<i32>} : memref<1x32x128xf32, #tpu.memory_space<vmem>>, vector<1x32x128xf32>,
    } else {
    }
    %c0 = arith.constant 0 : index
    %c0_1 = arith.constant 0 : index
    %c0_2 = arith.constant 0 : index
    %3 = vector.load %arg6[%c0, %c0_1, %c0_2] : memref<1x32x128xf32, #tpu.memory_space<vmem>>, vector<1x32x128xf32>
    %c0_3 = arith.constant 0 : index
    %c0_4 = arith.constant 0 : index
    %c0_5 = arith.constant 0 : index
    %4 = vector.load %arg7[%c0_3, %c0_4, %c0_5] : memref<1x32x128xf32, #tpu.memory_space<vmem>>, vector<1x32x128xf32>
    %c0_6 = arith.constant 0 : index
    %c0_7 = arith.constant 0 : index
    %c0_8 = arith.constant 0 : index
    %5 = vector.load %arg2[%c0_6, %c0_7, %c0_8] : memref<1x32x256xf32, #tpu.memory_space<vmem>>, vector<1x32x128xf32>
    %c256_i32 = arith.constant 256 : i32
    %6 = arith.muli %arg1, %c256_i32 : i32
    %c0_i32_9 = arith.constant 0 : i32
    %7 = arith.addi %6, %c0_i32_9 : i32
    %8 = tpu.iota {dimensions = array<i32: 2>} : vector<1x1x128xi32>
    %9 = vector.broadcast %7 : i32 to vector<1x1x128xi32>
    %10 = arith.addi %9, %8 : vector<1x1x128xi32>
    %c576_i32 = arith.constant 576 : i32
    %11 = vector.broadcast %c576_i32 : i32 to vector<1x1x128xi32>
    %12 = arith.cmpi slt, %10, %11 : vector<1x1x128xi32>
    %cst = arith.constant 0xFF800000 : f32
    %13 = vector.shape_cast %12 : vector<1x1x128xi1> to vector<1x1x128xi1>
    %14 = vector.broadcast %13 : vector<1x1x128xi1> to vector<1x32x128xi1>
    %15 = vector.broadcast %cst : f32 to vector<1x32x128xf32>
    %16 = arith.select %14, %5, %15 : vector<1x32x128xi1>, vector<1x32x128xf32>
    %17 = arith.maximumf %3, %16 : vector<1x32x128xf32>
    %18 = arith.addf %4, %5 : vector<1x32x128xf32>
    %c0_10 = arith.constant 0 : index
    %c0_11 = arith.constant 0 : index
    %c128 = arith.constant 128 : index
    %19 = vector.load %arg2[%c0_10, %c0_11, %c128] : memref<1x32x256xf32, #tpu.memory_space<vmem>>, vector<1x32x128xf32>
    %c256_i32_12 = arith.constant 256 : i32
    %20 = arith.muli %arg1, %c256_i32_12 : i32
    %c128_i32 = arith.constant 128 : i32
    %21 = arith.addi %20, %c128_i32 : i32
    %22 = tpu.iota {dimensions = array<i32: 2>} : vector<1x1x128xi32>
    %23 = vector.broadcast %21 : i32 to vector<1x1x128xi32>
    %24 = arith.addi %23, %22 : vector<1x1x128xi32>
    %c576_i32_13 = arith.constant 576 : i32
    %25 = vector.broadcast %c576_i32_13 : i32 to vector<1x1x128xi32>
    %26 = arith.cmpi slt, %24, %25 : vector<1x1x128xi32>
    %cst_14 = arith.constant 0xFF800000 : f32
    %27 = vector.shape_cast %26 : vector<1x1x128xi1> to vector<1x1x128xi1>
    %28 = vector.broadcast %27 : vector<1x1x128xi1> to vector<1x32x128xi1>
    %29 = vector.broadcast %cst_14 : f32 to vector<1x32x128xf32>
    %30 = arith.select %28, %19, %29 : vector<1x32x128xi1>, vector<1x32x128xf32>
    %31 = arith.maximumf %17, %30 : vector<1x32x128xf32>
    %32 = arith.addf %18, %19 : vector<1x32x128xf32>
    %c0_15 = arith.constant 0 : index
    %c0_16 = arith.constant 0 : index
    %c0_17 = arith.constant 0 : index
    %33 = vector.load %arg6[%c0_15, %c0_16, %c0_17] : memref<1x32x128xf32, #tpu.memory_space<vmem>>, vector<1x32x128xf32>
    tpu.vector_store %arg6[%c0_15, %c0_16, %c0_17], %31 {strides = array<i32>} : memref<1x32x128xf32, #tpu.memory_space<vmem>>, vector<1x32x128xf32>,
    %c0_18 = arith.constant 0 : index
    %c0_19 = arith.constant 0 : index
    %c0_20 = arith.constant 0 : index
    %34 = vector.load %arg7[%c0_18, %c0_19, %c0_20] : memref<1x32x128xf32, #tpu.memory_space<vmem>>, vector<1x32x128xf32>
    tpu.vector_store %arg7[%c0_18, %c0_19, %c0_20], %32 {strides = array<i32>} : memref<1x32x128xf32, #tpu.memory_space<vmem>>, vector<1x32x128xf32>,
    %c2_i32 = arith.constant 2 : i32
    %35 = arith.cmpi eq, %arg1, %c2_i32 : i32
    %36 = arith.extui %35 : i1 to i32
    %c0_i32_21 = arith.constant 0 : i32
    %37 = arith.cmpi ne, %36, %c0_i32_21 : i32
    scf.if %37 {
      %c0_22 = arith.constant 0 : index
      %c0_23 = arith.constant 0 : index
      %c0_24 = arith.constant 0 : index
      %38 = vector.load %arg6[%c0_22, %c0_23, %c0_24] : memref<1x32x128xf32, #tpu.memory_space<vmem>>, vector<1x32x128xf32>
      %cst_25 = arith.constant dense<0xFF800000> : vector<1x32xf32>
      %39 = vector.multi_reduction <maximumf>, %38, %cst_25 [2] : vector<1x32x128xf32> to vector<1x32xf32>
      %c0_26 = arith.constant 0 : index
      %c0_27 = arith.constant 0 : index
      %c0_28 = arith.constant 0 : index
      %40 = vector.load %arg7[%c0_26, %c0_27, %c0_28] : memref<1x32x128xf32, #tpu.memory_space<vmem>>, vector<1x32x128xf32>
      %cst_29 = arith.constant dense<0.000000e+00> : vector<1x32xf32>
      %41 = vector.multi_reduction <add>, %40, %cst_29 [2] : vector<1x32x128xf32> to vector<1x32xf32>
      %cst_30 = arith.constant 0.00173611112 : f32
      %42 = vector.broadcast %cst_30 : f32 to vector<1x32xf32>
      %43 = arith.mulf %41, %42 : vector<1x32xf32>
      %44 = tpu.concatenate %39, %43 in 0 : vector<1x32xf32>, vector<1x32xf32> -> vector<2x32xf32>
      %c0_31 = arith.constant 0 : index
      %c0_32 = arith.constant 0 : index
      %45 = vector.load %arg3[%c0_31, %c0_32] : memref<32x2xf32, #tpu.memory_space<vmem>>, vector<32x2xf32>
      %c0_33 = arith.constant 0 : index
      %c0_34 = arith.constant 0 : index
      %46 = vector.load %arg4[%c0_33, %c0_34] : memref<2x32xf32, #tpu.memory_space<vmem>>, vector<2x32xf32>
      %cst_35 = arith.constant dense<0.000000e+00> : vector<2x2xf32>
      %47 = tpu.matmul %44, %45, %cst_35 {dimension_numbers = #tpu.dot_dimension_numbers<[1], [0], [0], [1], [0, 0, 1, 1], [], []>} : vector<2x32xf32>, vector<32x2xf32>, vector<2x2xf32> -> vector<2x2xf32>
      %cst_36 = arith.constant 0.000000e+00 : f32
      %48 = vector.broadcast %cst_36 : f32 to vector<2x2xf32>
      %49 = arith.maximumf %47, %48 : vector<2x2xf32>
      %cst_37 = arith.constant dense<0.000000e+00> : vector<2x32xf32>
      %50 = tpu.matmul %49, %46, %cst_37 {dimension_numbers = #tpu.dot_dimension_numbers<[1], [0], [0], [1], [0, 0, 1, 1], [], []>} : vector<2x2xf32>, vector<2x32xf32>, vector<2x32xf32> -> vector<2x32xf32>
      %51 = vector.extract_strided_slice %50 {offsets = [0, 0], sizes = [1, 32], strides = [1, 1]} : vector<2x32xf32> to vector<1x32xf32>
      %52 = vector.extract_strided_slice %50 {offsets = [1, 0], sizes = [1, 32], strides = [1, 1]} : vector<2x32xf32> to vector<1x32xf32>
      %53 = arith.addf %51, %52 : vector<1x32xf32>
      %54 = arith.negf %53 : vector<1x32xf32>
      %55 = math.exp %54 : vector<1x32xf32>
      %cst_38 = arith.constant 1.000000e+00 : f32
      %56 = vector.broadcast %cst_38 : f32 to vector<1x32xf32>
      %57 = arith.addf %56, %55 : vector<1x32xf32>
      %58 = arith.divf %56, %57 : vector<1x32xf32>
      %59 = vector.shape_cast %58 : vector<1x32xf32> to vector<1x1x32xf32>
      %c0_39 = arith.constant 0 : index
      %c0_40 = arith.constant 0 : index
      %c0_41 = arith.constant 0 : index
      %60 = vector.load %arg5[%c0_39, %c0_40, %c0_41] : memref<1x1x32xf32, #tpu.memory_space<vmem>>, vector<1x1x32xf32>
      tpu.vector_store %arg5[%c0_39, %c0_40, %c0_41], %59 {strides = array<i32>} : memref<1x1x32xf32, #tpu.memory_space<vmem>>, vector<1x1x32xf32>,
    } else {
    }
    return
  }
  func.func @transform_0(%arg0: i32, %arg1: i32) -> (i32, i32, i32) {
    %c0_i32 = arith.constant 0 : i32
    %c0_i32_0 = arith.constant 0 : i32
    return %arg0, %c0_i32, %arg1 : i32, i32, i32
  }
  func.func @transform_1(%arg0: i32, %arg1: i32) -> (i32, i32) {
    %c0_i32 = arith.constant 0 : i32
    %c0_i32_0 = arith.constant 0 : i32
    %c0_i32_1 = arith.constant 0 : i32
    return %c0_i32, %c0_i32_0 : i32, i32
  }
  func.func @transform_2(%arg0: i32, %arg1: i32) -> (i32, i32) {
    %c0_i32 = arith.constant 0 : i32
    %c0_i32_0 = arith.constant 0 : i32
    %c0_i32_1 = arith.constant 0 : i32
    return %c0_i32, %c0_i32_0 : i32, i32
  }
  func.func @transform_3(%arg0: i32, %arg1: i32) -> (i32, i32, i32) {
    %c0_i32 = arith.constant 0 : i32
    %c0_i32_0 = arith.constant 0 : i32
    %c0_i32_1 = arith.constant 0 : i32
    return %arg0, %c0_i32, %c0_i32_0 : i32, i32, i32
  }
}

</mosaic_0001>

<bundles_post_ra>
// kernel: tpu_custom_call.1
= control target key start
LH: loop header
LB: loop body
LE: loop exit
PB: predicated region body
PF: predicated region fallthrough
CT: control target
= control target key end

     0   :  { %8 = vsyncpa [#allocation5], 0  ;;  %s1049_s0 = inlined_call_operand.hbm [shape: f32[2,32,768], index: 0, kind: input, shape index: {}]   ;;  %s1050_s1 = inlined_call_operand.vmem [shape: f32[32,2], index: 1, kind: input, shape index: {}]   ;;  %s1051_s2 = inlined_call_operand.vmem [shape: f32[2,32], index: 2, kind: input, shape index: {}]   ;;  %s1052_s3 = inlined_call_operand.hbm [shape: f32[2,1,32], index: 3, kind: output, shape index: {}]  }
   0x1   :  { %10 = vsyncpa [#allocation5 + $0x1], 0 }
   0x2   :  { %11 = vsyncpa [#allocation6], 0 }
   0x3   :  { %13 = vsyncpa [#allocation6 + $0x1], 0  ;;  %s830_s12 = smov 0   ;;  %s832_s13 = smov 0  }
   0x4   :  { %s834_s14 = smov 0   ;;  %s836_s15 = smov 0  }
   0x5   :  { %s838_s16 = smov 0   ;;  %s840_s17 = smov 0  }
   0x6   :  { %s842_s18 = smov 0   ;;  %s844_s19 = smov 0  }
   0x7   :  { %s846_s20 = smov 0   ;;  %s848_s21 = smov 0  }
   0x8   :  { %s850_s22 = smov 0  }
   0x9 LB: > { %1058 = sst [smem:[#allocation10_spill]] %s771_s14  ;;  %s521_s23 = sadd.s32 4294967295, %s803_s22   ;;  %s803_s22 = sphi %s850_s22, %s19_s22   ;;  %s799_s21 = sphi %s848_s21, %s1082_s21   ;;  %s795_s20 = sphi %s846_s20, %s1074_s20   ;;  %s791_s19 = sphi %s844_s19, %s1081_s19   ;;  %s787_s18 = sphi %s842_s18, %s1073_s18   ;;  %s783_s17 = sphi %s840_s17, %s1072_s17   ;;  %s779_s16 = sphi %s838_s16, %s1080_s16   ;;  %s775_s15 = sphi %s836_s15, %s1079_s15   ;;  %s771_s14 = sphi %s834_s14, %s1078_s14   ;;  %s767_s13 = sphi %s832_s13, %s1077_s13   ;;  %s763_s12 = sphi %s830_s12, %s1076_s12  }
   0xa   : > { %1059 = sst [smem:[#allocation11_spill]] %s783_s17  ;;  %s522_s24 = sadd.s32 4294967294, %s803_s22  }
   0xb   : > { %1060 = sst [smem:[#allocation12_spill]] %s795_s20  ;;  %s28_s25 = sadd.s32 1, %s795_s20 }
   0xc   : > { %s31_s26 = sadd.s32 1, %s799_s21  ;;  %p29_p0 = scmp.ge.s32.totalorder %s28_s25, 3 }
   0xd   : > { %s40_s27 = sadd.s32 1, %s783_s17  ;;  %p47_p1 = scmp.ne.s32.totalorder %s783_s17, %s779_s16 }
   0xe   : > { %p48_p2 = scmp.eq.s32.totalorder %s803_s22, 0  ;;  %s1084_s25 = smov (%p29_p0, %s28_s25), 0 }
   0xf   : > { %1061 = sst [smem:[#allocation13_spill]] %s1084_s25  ;;  %s1086_s26 = smov (!%p29_p0, %s31_s26), %s799_s21 }
  0x10   : > { %s36_s28 = ssub.s32 %s795_s20, %s1084_s25  ;;  %p896_p3 = por %p48_p2, %p47_p1 }
  0x11   : > { %p33_p4 = scmp.ge.s32.totalorder %s1086_s26, 2  ;;  %p53_p5 = scmp.ne.s32.totalorder %s779_s16, %s775_s15 }
  0x12   : > { %p54_p6 = scmp.eq.s32.totalorder %s521_s23, 0  ;;  %s108_s30 = sadd.s32 1, %s771_s14 }
  0x13   : > { %s1088_s26 = smov (%p33_p4, %s1086_s26), 0  ;;  %p118_p8 = scmp.ne.s32.totalorder %s771_s14, %s767_s13 }
  0x14   : > { %1063 = sst [smem:[#allocation14_spill]] %s1088_s26  ;;  %p904_p7 = por %p54_p6, %p53_p5 }
  0x15   : > { %s35_s5 = ssub.s32 %s799_s21, %s1088_s26  ;;  %p119_p9 = scmp.eq.s32.totalorder %s521_s23, 5 }
  0x16   : > { %s37_s6 = sor.u32 %s36_s28, %s35_s5  ;;  %p106_p10 = scmp.eq.s32.totalorder %s35_s5, 0 }
  0x17   : > { %p38_p11 = scmp.eq.s32.totalorder %s37_s6, 0  ;;  %p912_p12 = por %p119_p9, %p118_p8 }
  0x18   : > { %s917_s8 = scalar_select %p106_p10, %s771_s14, %s108_s30  }
  0x19   : > { %s920_s9 = scalar_select %p38_p11, %s783_s17, %s40_s27  }
  0x1a   : > { %1066 = sst [smem:[#allocation15_spill]] %s917_s8  ;;  %p124_p13 = scmp.ne.s32.totalorder %s767_s13, %s763_s12 }
  0x1b   : > { %1067 = sst [smem:[#allocation16_spill]] %s920_s9  ;;  %p125_p0 = scmp.eq.s32.totalorder %s522_s24, 5 }
  0x1c   : > { %p552_p1 = scmp.lt.s32.totalorder %s803_s22, 6  ;;  %s151_s11 = sand.u32 1, %s783_s17  }
  0x1d   : > { %p925_p2 = por %p125_p0, %p124_p13  ;;  %s525_s15 = sshll.u32 %s151_s11, 6 }
  0x1e   : > { %s526_s23 = sshll.u32 %s795_s20, 1  ;;  %s539_s28 = smul.u32 24, %s799_s21 }
  0x1f   : > { %s155_s5 = scalar_lea.vmem [#allocation4], %s525_s15  ;;  %p545_p4 = pnand %p552_p1, %p896_p3 }
  0x20   : > { %s165_s6 = sshll.u32 %s155_s5, 4  ;;  %s160_s27 = sadd.s32 %s539_s28, %s526_s23  ;;  %s166_s6 = int_to_ptr.vmem [resolvable:$true] %s165_s6 }
  0x21   : > { %s527_s30 = sshll.u32 %s160_s27, 3  ;;  %p528_p5 = scmp.ge.s32.totalorder %s803_s22, 1 }
  0x22   : > { %s162_s25 = scalar_lea.hbm %s1049_s0, %s527_s30  ;;  %s152_s8 = scalar_lea.sflag [#allocation5], %s151_s11 }
  0x23   : > { %s163_s9 = sshll.u32 %s162_s25, 4  ;;  %s805_s17 = smov 768   ;;  %s164_s9 = int_to_ptr.hbm [resolvable:$true] %s163_s9 }
  0x24   : > { %s806_s14 = smov 256   ;;  %s807_s20 = smov 16  }
  0x25   : > { %547 = dma.hbm_to_vmem [thread:$0]  (!%p545_p4), %s164_s9, 1024, %s166_s6, %s152_s8, %s805_s17, %s806_s14, %s807_s20  }
  0x26   : > { %p173_p6 = scmp.lt.s32.totalorder %s803_s22, 7 }
  0x28   : > { %p174_p8 = pnand %p528_p5, %p173_p6 }
  0x29   : > { %s179_s29 = sand.u32 (!%p174_p8), 1, %s779_s16  }
  0x2a   : > { %177 = sbr.rel (%p174_p8) target bundleno = 526 (0x20e), region = 32  ;;  %s529_s15 = sshll.u32 (!%p174_p8), %s179_s29, 6 }
  0x2b   : > { %s180_s23 = scalar_lea.sflag (!%p174_p8), [#allocation5], %s179_s29  ;;  %s940_s28 = scalar_lea.vmem (!%p174_p8), [#allocation4], %s529_s15 }
  0x2f   : > { %754 = dma.done.wait (%p904_p7), %s180_s23, 1024  }
  0x30   : > { %756 = vsyncadd (%p904_p7), %s180_s23, 4294966272  ;;  %s204_s25 = sand.u32 1, %s767_s13   ;;  %p530_p3 = scmp.ne.s32.totalorder %s787_s18, 0 }
  0x31   : > { %s949_s14 = scalar_lea.vmem [#allocation7], %s204_s25 }
  0x32   : > { %210 = sbr.rel (%p530_p3) target bundleno = 64 (0x40), region = 40 }
  0x37   : > { %v808_v0 = vmov -inf   ;;  %v809_v1 = vmov 0.0  }
  0x38   : > { %211 = vst [vmem:[#allocation2 + $0x10] sm:$0xff] %v808_v0 }
  0x39   : > { %212 = vst [vmem:[#allocation2] sm:$0xff] %v808_v0 }
  0x3a   : > { %213 = vst [vmem:[#allocation2 + $0x18] sm:$0xff] %v808_v0 }
  0x3b   : > { %214 = vst [vmem:[#allocation2 + $0x8] sm:$0xff] %v808_v0 }
  0x3c   : > { %215 = vst [vmem:[#allocation3] sm:$0xff] %v809_v1 }
  0x3d   : > { %216 = vst [vmem:[#allocation3 + $0x18] sm:$0xff] %v809_v1 }
  0x3e   : > { %217 = vst [vmem:[#allocation3 + $0x8] sm:$0xff] %v809_v1 }
  0x3f   : > { %218 = vst [vmem:[#allocation3 + $0x10] sm:$0xff] %v809_v1 }
  0x40 PF: > { %s531_s17 = sshll.u32 %s787_s18, 8  ;;  %v232_v2 = vlaneseq  ;;  %v227_v4 = vld [vmem:[%s940_s28] sm:$0xff]  ;;  %v251_v6 = vld [vmem:[%s940_s28 + $0x8] sm:$0xff]  ;;  %v228_v8 = vld [vmem:[%s940_s28 + $0x10] sm:$0xff]  ;;  %p532_p7 = scmp.ne.s32.totalorder %s787_s18, 2 }
  0x41   : > { %v234_v3 = vstv %s531_s17  ;;  %s255_s20 = sadd.s32 128, %s531_s17  ;;  %v252_v9 = vld [vmem:[%s940_s28 + $0x18] sm:$0xff]  ;;  %v229_v10 = vld [vmem:[%s940_s28 + $0x20] sm:$0xff]  ;;  %v219_v16 = vld [vmem:[#allocation2 + $0x10] sm:$0xff] }
  0x42   : > { %v954_v5 = vand.u32 127, %v232_v2  ;;  %v256_v7 = vstv %s255_s20  ;;  %v220_v17 = vld [vmem:[#allocation2] sm:$0xff]  ;;  %v253_v18 = vld [vmem:[%s940_s28 + $0x28] sm:$0xff]  ;;  %v221_v20 = vld [vmem:[#allocation2 + $0x18] sm:$0xff] }
  0x43   : > { %v223_v13 = vld [vmem:[#allocation3] sm:$0xff]  ;;  %v230_v21 = vld [vmem:[%s940_s28 + $0x30] sm:$0xff]  ;;  %v254_v22 = vld [vmem:[%s940_s28 + $0x38] sm:$0xff] }
  0x44   : > { %v235_v11 = vadd.s32 %v234_v3, %v954_v5  ;;  %v257_v12 = vadd.s32 %v256_v7, %v954_v5  ;;  %v224_v14 = vld [vmem:[#allocation3 + $0x18] sm:$0xff]  ;;  %v247_v19 = vadd.f32 %v227_v4, %v223_v13  ;;  %v222_v29 = vld [vmem:[#allocation2 + $0x8] sm:$0xff] }
  0x45   : > { %v225_v15 = vld [vmem:[#allocation3 + $0x8] sm:$0xff]  ;;  %v248_v23 = vadd.f32 %v228_v8, %v224_v14 }
  0x46   : > { %vm236_vm0 = vcmp.lt.s32.totalorder %v235_v11, 576  ;;  %vm258_vm1 = vcmp.lt.s32.totalorder %v257_v12, 576  ;;  %v249_v24 = vadd.f32 %v229_v10, %v225_v15  ;;  %v226_v30 = vld [vmem:[#allocation3 + $0x10] sm:$0xff]  ;;  %v269_v38 = vadd.f32 %v251_v6, %v247_v19 }
  0x47   : > { %v239_v25 = vsel %vm236_vm0, %v227_v4, -inf  ;;  %v261_v26 = vsel %vm258_vm1, %v251_v6, -inf  ;;  %v240_v27 = vsel %vm236_vm0, %v228_v8, -inf  ;;  %v262_v28 = vsel %vm258_vm1, %v252_v9, -inf }
  0x48   : > { %v243_v31 = vmax.f32 %v219_v16, %v239_v25  ;;  %v244_v32 = vmax.f32 %v220_v17, %v240_v27  ;;  %v241_v33 = vsel %vm236_vm0, %v229_v10, -inf  ;;  %v263_v34 = vsel %vm258_vm1, %v253_v18, -inf  ;;  %277 = vst [vmem:[#allocation3] sm:$0xff] %v269_v38 }
  0x49   : > { %v245_v35 = vmax.f32 %v221_v20, %v241_v33  ;;  %v242_v36 = vsel %vm236_vm0, %v230_v21, -inf  ;;  %v264_v37 = vsel %vm258_vm1, %v254_v22, -inf  ;;  %v250_v42 = vadd.f32 %v230_v21, %v226_v30 }
  0x4a   : > { %v265_v39 = vmax.f32 %v243_v31, %v261_v26  ;;  %v266_v40 = vmax.f32 %v244_v32, %v262_v28  ;;  %v246_v41 = vmax.f32 %v222_v29, %v242_v36  ;;  %v270_v45 = vadd.f32 %v252_v9, %v248_v23 }
  0x4b   : > { %v267_v43 = vmax.f32 %v245_v35, %v263_v34  ;;  %v271_v46 = vadd.f32 %v253_v18, %v249_v24  ;;  %v272_v47 = vadd.f32 %v254_v22, %v250_v42 }
  0x4c   : > { %273 = vst [vmem:[#allocation2 + $0x10] sm:$0xff] %v265_v39  ;;  %v268_v44 = vmax.f32 %v246_v41, %v264_v37 }
  0x4d   : > { %274 = vst [vmem:[#allocation2] sm:$0xff] %v266_v40 }
  0x4e   : > { %275 = vst [vmem:[#allocation2 + $0x18] sm:$0xff] %v267_v43  ;;  %284 = sbr.rel (%p532_p7) target bundleno = 512 (0x200), region = 44 }
  0x4f   : > { %276 = vst [vmem:[#allocation2 + $0x8] sm:$0xff] %v268_v44 }
  0x50   : > { %278 = vst [vmem:[#allocation3 + $0x18] sm:$0xff] %v270_v45 }
  0x51   : > { %279 = vst [vmem:[#allocation3 + $0x8] sm:$0xff] %v271_v46 }
  0x52   : > { %280 = vst [vmem:[#allocation3 + $0x10] sm:$0xff] %v272_v47 }
  0x53   : > { %v297_v49 = vld [vmem:[#allocation3] sm:$0xff]  ;;  %v285_v52 = vld [vmem:[#allocation2 + $0x10] sm:$0xff]  ;;  %v348_v56 = vld [vmem:[%s1050_s1 + $0x18] sm:$0xff]  ;;  %v318_v2 = vadd.s32 4294967288, %v954_v5  ;;  %v322_v6 = vadd.s32 4294967280, %v954_v5  ;;  %v326_v10 = vadd.s32 4294967272, %v954_v5 }
  0x54   : > { %v286_v50 = vld [vmem:[#allocation2] sm:$0xff]  ;;  %301 = vadd.xlane.f32.xlu0 %v297_v49  ;;  %366 = vmatpush.msra.mxu0 %v348_v56  ;;  %v347_v57 = vld [vmem:[%s1050_s1 + $0x10] sm:$0xff]  ;;  %v346_v58 = vld [vmem:[%s1050_s1 + $0x8] sm:$0xff]  ;;  %vm320_vm2 = vcmask 130112   ;;  %vm324_vm3 = vcmask 195712   ;;  %vm328_vm4 = vcmask 261312  }
  0x55   : > { %291 = vmax.xlane.f32.xlu2 %v286_v50  ;;  %v287_v54 = vld [vmem:[#allocation2 + $0x18] sm:$0xff]  ;;  %v345_v59 = vld [vmem:[%s1050_s1] sm:$0xff]  ;;  %vm343_vm5 = vcmask 1040384   ;;  %vm350_vm6 = vcmask 261120   ;;  %vm379_vm7 = vcmask 1041408   ;;  %vm375_vm8 = vcmask 15360  }
  0x56   : > { %v288_v55 = vld [vmem:[#allocation2 + $0x8] sm:$0xff]  ;;  %367 = vmatpush.msra.mxu0 %v347_v57  ;;  %vm426_vm12 = vcmask 253952  }
  0x57   : > { %v298_v51 = vld [vmem:[#allocation3 + $0x18] sm:$0xff] }
  0x58   : > { %v299_v48 = vld [vmem:[#allocation3 + $0x8] sm:$0xff]  ;;  %368 = vmatpush.msra.mxu0 %v346_v58 }
  0x59   : > { %305 = vadd.xlane.f32.xlu1 %v299_v48  ;;  %v300_v53 = vld [vmem:[#allocation3 + $0x10] sm:$0xff] }
  0x5a   : > { %369 = vmatpush.msra.mxu0 %v345_v59 }
  0x5c   : > { %303 = vadd.xlane.f32.xlu0 %v298_v51 }
  0x5d   : > { %307 = vadd.xlane.f32.xlu2 %v300_v53 }
  0x61   : > { %289 = vmax.xlane.f32.xlu1 %v285_v52 }
  0x64   : > { %293 = vmax.xlane.f32.xlu0 %v287_v54 }
  0x69   : > { %295 = vmax.xlane.f32.xlu1 %v288_v55 }
  0xc7   : > { %v302_v61 = vpop.xlane.xlu0 %301 }
  0xc8   : > { %v292_v62 = vpop.xlane.xlu2 %291  ;;  %v309_v63 = vmul.f32 0.0017361111, %v302_v61 }
  0xc9   : > { %v319_v12 = vperm.slane %v292_v62, %v318_v2 }
  0xca   : > { %v335_v9 = vperm.slane %v309_v63, %v954_v5 }
  0xcc   : > { %v306_v60 = vpop.xlane.xlu1 %305 }
  0xcd   : > { %v311_v7 = vmul.f32 0.0017361111, %v306_v60 }
  0xcf   : > { %v304_v0 = vpop.xlane.xlu0 %303  ;;  %v338_v15 = vperm.slane %v311_v7, %v322_v6 }
  0xd0   : > { %v310_v3 = vmul.f32 0.0017361111, %v304_v0  ;;  %v308_v4 = vpop.xlane.xlu2 %307 }
  0xd1   : > { %v312_v11 = vmul.f32 0.0017361111, %v308_v4 }
  0xd2   : > { %v336_v8 = vperm.slane %v310_v3, %v318_v2 }
  0xd3   : > { %v340_v16 = vperm.slane %v312_v11, %v326_v10 }
  0xd4   : > { %v290_v1 = vpop.xlane.xlu1 %289  ;;  %v337_v13 = vsel %vm320_vm2, %v336_v8, %v335_v9 }
  0xd5   : > { %v317_v14 = vperm.slane %v290_v1, %v954_v5  ;;  %v339_v21 = vsel %vm324_vm3, %v338_v15, %v337_v13  ;;  %v349_v5 = vld [vmem:[%s1051_s2] sm:$0x3] }
  0xd6   : > { %v341_v25 = vsel %vm328_vm4, %v340_v16, %v339_v21  ;;  %534 = vmatpush.msk.msra.mxu1 %vm379_vm7, %v349_v5 }
  0xd7   : > { %v294_v17 = vpop.xlane.xlu0 %293  ;;  %v321_v22 = vsel %vm320_vm2, %v319_v12, %v317_v14 }
  0xd8   : > { %v323_v19 = vperm.slane %v294_v17, %v322_v6 }
  0xda   : > { %v325_v23 = vsel %vm324_vm3, %v323_v19, %v321_v22 }
  0xdc   : > { %v296_v18 = vpop.xlane.xlu1 %295 }
  0xdd   : > { %v327_v20 = vperm.slane %v296_v18, %v326_v10 }
  0xdf   : > { %v329_v24 = vsel %vm328_vm4, %v327_v20, %v325_v23 }
  0xe0   : > { %v344_v26 = vsel %vm343_vm5, %v329_v24, %v341_v25 }
  0xe1   : > { %533 = vmatmul.msk.f32.vlgmr.msra.gmra.mxu0 %vm350_vm6, %v344_v26 }
 0x15e   : > { %v371_v27 = vpop.f32.mrf.mxu0 }
 0x15f   : > { %v374_v28 = vmax.f32 %v371_v27, 0.0 }
 0x161   : > { %535 = vmatmul.msk.f32.vlgmr.msra.gmra.mxu1 %vm375_vm8, %v374_v28 }
 0x1de   : > { %v400_v29 = vpop.f32.mrf.mxu1 }
 0x1df   : > { %v404_v30 = vrot.slane %v400_v29, 1 }
 0x1e1   : > { %v406_v31 = vadd.f32 %v404_v30, %v400_v29 }
 0x1e3   : > { %v536_v32 = vmul.f32 -1.442695, %v406_v31 }
 0x1e5   : > { %647 = vpow2.f32 %v536_v32 }
 0x1eb   : > { %v648_v33 = vpop.eup %647 }
 0x1ec   : > { %v410_v34 = vadd.f32 1.0, %v648_v33 }
 0x1ee   : > { %649 = vrcp.f32 %v410_v34  ;;  %v422_v38 = vand.u32 2147483648, %v410_v34  ;;  %v420_v40 = vand.u32 2147483647, %v410_v34  ;;  %vm416_vm10 = vweird.f32 %v410_v34 }
 0x1f0   : > { %v423_v42 = vor.u32 1.1754944e-38, %v422_v38  ;;  %vm421_vm13 = vcmp.eq.f32.partialorder %v420_v40, 8.507059e+37 }
 0x1f4   : > { %v650_v35 = vpop.eup %649 }
 0x1f5   : > { %v412_v36 = vmul.f32 %v650_v35, %v410_v34  ;;  %vm417_vm9 = vweird.f32 %v650_v35 }
 0x1f6   : > { %vm418_vm11 = vmor %vm416_vm10, %vm417_vm9 }
 0x1f7   : > { %v413_v37 = vsub.f32 1.0, %v412_v36 }
 0x1f9   : > { %v414_v39 = vmul.f32 %v650_v35, %v413_v37 }
 0x1fb   : > { %v415_v41 = vadd.f32 %v650_v35, %v414_v39 }
 0x1fd   : > { %v419_v43 = vsel %vm418_vm11, %v650_v35, %v415_v41 }
 0x1fe   : > { %v424_v44 = vsel %vm421_vm13, %v423_v42, %v419_v43 }
 0x1ff   : > { %427 = vst.msk [vmem:[%s949_s14] sm:$0x1] %vm426_vm12, %v424_v44 }
 0x200 PF: > { %s437_s15 = scalar_lea.hbm %s1052_s3, %s791_s19  ;;  %s439_s23 = sshll.u32 %s949_s14, 4  ;;  %s440_s23 = int_to_ptr.vmem [resolvable:$true] %s439_s23 }
 0x201   : > { %s441_s28 = sshll.u32 %s437_s15, 4  ;;  %s429_s17 = scalar_lea.sflag [#allocation6], %s204_s25  ;;  %s442_s28 = int_to_ptr.hbm [resolvable:$true] %s441_s28 }
 0x202   : > { %s695_s20 = sshra.s32 %s442_s28, 4  ;;  %s701_s8 = scalar_lea.hbm %s1052_s3, 2  ;;  %s696_s20 = int_to_ptr.hbm [resolvable:$true] %s695_s20 }
 0x203   : > { %s697_s26 = scalar_lea.hbm %s696_s20, 1  ;;  %p702_p13 = scmp.lt.s32.totalorder %s696_s20, %s1052_s3 }
 0x204   : > { %p698_p9 = scmp.ne.s32.totalorder %s696_s20, %s697_s26  ;;  %p703_p0 = scmp.lt.s32.totalorder %s701_s8, %s697_s26 }
 0x206   : > { %p699_p10 = pnand %p698_p9, %p912_p12  ;;  %p704_p1 = por %p703_p0, %p702_p13 }
 0x208   : > { %p700_p11 = pneg %p699_p10 }
 0x20a   : > { %p705_p4 = pnand %p704_p1, %p700_p11 }
 0x20c   : > { %708 = shalt.err (!%p705_p4)
}
 0x20d   : > { %542 = dma.vmem_to_hbm [thread:$0]  (%p912_p12), %s440_s23, 16, %s442_s28, %s429_s17  }
 0x20e PF: > { %p553_p5 = scmp.ge.s32.totalorder %s803_s22, 2  ;;  %s453_s19 = sand.u32 1, %s763_s12  }
 0x20f   : > { %s454_s25 = scalar_lea.sflag [#allocation6], %s453_s19 }
 0x210   : > { %p549_p6 = pnand %p553_p5, %p925_p2 }
 0x212   : > { %p550_p8 = pneg %p549_p6 }
 0x214   : > { %758 = dma.done.wait (%p550_p8), %s454_s25, 16  }
 0x215   : > { %760 = vsyncadd (%p550_p8), %s454_s25, 4294967280  ;;  %s19_s22 = sadd.s32 1, %s803_s22   ;;  %s1069_s14 = sld [smem:[#allocation10_spill]] }
 0x216   : > { %p16_p3 = scmp.ge.s32.totalorder %s19_s22, 8   ;;  %s1070_s5 = sld [smem:[#allocation15_spill]] }
 0x217   : > { %s1071_s7 = sld [smem:[#allocation11_spill]]  ;;  %s1076_s12 = smov %s767_s13 }
 0x218   : > { %s1072_s17 = sld [smem:[#allocation16_spill]]  ;;  %s1079_s15 = smov %s779_s16 }
 0x219   : > { %s1073_s18 = sld [smem:[#allocation12_spill]]  ;;  %s1081_s19 = smov %s799_s21 }
 0x21a   : > { %s1074_s20 = sld [smem:[#allocation13_spill]] }
 0x21b   : > { %s1075_s6 = sld [smem:[#allocation14_spill]]  ;;  %s1077_s13 = smov %s1069_s14 }
 0x21c   : > { %s1078_s14 = smov %s1070_s5 }
 0x21d   : > { %s1080_s16 = smov %s1071_s7  ;;  %18 = sbr.rel (!%p16_p3) target bundleno = 9 (0x9), region = 85 }
 0x221   : > { %s1082_s21 = smov %s1075_s6 }
 0x222   :  { %459 = vsyncpa [#allocation5], 1 }
 0x223   :  { %461 = vsyncpa [#allocation5 + $0x1], 1 }
 0x224   :  { %462 = vsyncpa [#allocation6], 1 }
 0x225   :  { %464 = vsyncpa [#allocation6 + $0x1], 1 }

</bundles_post_ra>
